<compile_context>
chip_gen: v6e
topology: v6e:2x2x1
jax: 0.10.0
libtpu: 0.0.40
codegen_flags: <defaults>
</compile_context>

<pallas_src>
import functools

import jax
import jax.numpy as jnp
from jax.experimental import pallas as pl
from jax.experimental.pallas import tpu as pltpu


# ------------------------------ small helpers ------------------------------ #

def _round_up(x, m):
    return ((x + m - 1) // m) * m


def _round_c(c):
    """Physical (lane-dense) channel count: multiples of 128."""
    return _round_up(c, 128)


@functools.lru_cache(maxsize=None)
def _vmem_limit():
    # Generation-aware VMEM budget: ~75% of physical VMEM, capped at 96 MiB.
    # (v5e/v6e: 128 MiB -> 96 MiB; v7x: 64 MiB -> 48 MiB; fallback 48 MiB.)
    cap = 64 * 1024 * 1024
    try:
        info = pltpu.get_tpu_info()
        cap = int(getattr(info, "vmem_capacity_bytes", cap))
    except Exception:
        pass
    return min(cap * 3 // 4, 96 * 1024 * 1024)


def _pick_tm(m):
    for tm in (512, 256, 128):
        if m >= tm:
            return tm
    return _round_up(max(m, 8), 8)


def _pick_tk(k):
    if k <= 1024:
        return k
    for tk in (1024, 896, 768, 640, 512, 384, 256, 128):
        if k % tk == 0:
            return tk
    return k


# ----------------------------- Pallas kernels ------------------------------ #

def _gemm_bn_kernel(a_ref, b_ref, s_ref, c_ref, o_ref, acc_ref, *, relu):
    # (tm, tk) @ (tk, Cout) on the MXU (bf16 in, f32 acc), K-tiled accumulation.
    @pl.when(pl.program_id(1) == 0)
    def _init():
        acc_ref[...] = jnp.zeros_like(acc_ref)

    acc_ref[...] += jnp.dot(a_ref[...], b_ref[...],
                            preferred_element_type=jnp.float32)

    @pl.when(pl.program_id(1) == pl.num_programs(1) - 1)
    def _finish():
        y = acc_ref[...] * s_ref[...] + c_ref[...]
        if relu:
            y = jnp.maximum(y, 0.0)
        o_ref[...] = y.astype(o_ref.dtype)


def _gemm_bn_res_kernel(a_ref, b_ref, s_ref, c_ref, r_ref, o_ref, acc_ref, *,
                        relu):
    # Same as above + fused residual add (BasicBlock tail). `relu` is honored.
    @pl.when(pl.program_id(1) == 0)
    def _init():
        acc_ref[...] = jnp.zeros_like(acc_ref)

    acc_ref[...] += jnp.dot(a_ref[...], b_ref[...],
                            preferred_element_type=jnp.float32)

    @pl.when(pl.program_id(1) == pl.num_programs(1) - 1)
    def _finish():
        y = acc_ref[...] * s_ref[...] + c_ref[...] + r_ref[...].astype(jnp.float32)
        if relu:
            y = jnp.maximum(y, 0.0)
        o_ref[...] = y.astype(o_ref.dtype)


def _maxpool_kernel(x_ref, o_ref):
    # x_ref: (T, tm, C) shifted-window taps; reduce over the tap axis.
    o_ref[...] = jnp.max(x_ref[...], axis=0)


# --------------------------- Pallas call wrappers --------------------------- #

def _gemm_bn(A, B, scale, bias, relu, residual=None):
    """A:(M,K) bf16, B:(K,Cout) bf16, scale/bias:(1,Cout) f32 -> (M,Cout) bf16."""
    M, K = A.shape
    _, Cout = B.shape

    tm = _pick_tm(M)
    Mp = _round_up(M, tm)
    if Mp != M:
        A = jnp.pad(A, ((0, Mp - M), (0, 0)))
        if residual is not None:
            residual = jnp.pad(residual, ((0, Mp - M), (0, 0)))
    tk = _pick_tk(K)
    grid = (Mp // tm, K // tk)

    a_spec = pl.BlockSpec((tm, tk), lambda i, k: (i, k))
    b_spec = pl.BlockSpec((tk, Cout), lambda i, k: (k, 0))
    v_spec = pl.BlockSpec((1, Cout), lambda i, k: (0, 0))
    o_spec = pl.BlockSpec((tm, Cout), lambda i, k: (i, 0))
    out_shape = jax.ShapeDtypeStruct((Mp, Cout), jnp.bfloat16)
    scratch = [pltpu.VMEM((tm, Cout), jnp.float32)]
    cp = pltpu.CompilerParams(
        dimension_semantics=("parallel", "arbitrary"),
        vmem_limit_bytes=_vmem_limit())

    if residual is None:
        out = pl.pallas_call(
            functools.partial(_gemm_bn_kernel, relu=relu),
            grid=grid,
            in_specs=[a_spec, b_spec, v_spec, v_spec],
            out_specs=o_spec,
            out_shape=out_shape,
            scratch_shapes=scratch,
            compiler_params=cp,
        )(A, B, scale, bias)
    else:
        r_spec = pl.BlockSpec((tm, Cout), lambda i, k: (i, 0))
        out = pl.pallas_call(
            functools.partial(_gemm_bn_res_kernel, relu=relu),
            grid=grid,
            in_specs=[a_spec, b_spec, v_spec, v_spec, r_spec],
            out_specs=o_spec,
            out_shape=out_shape,
            scratch_shapes=scratch,
            compiler_params=cp,
        )(A, B, scale, bias, residual)

    return out[:M] if Mp != M else out


def conv_bn(x, p, stride, padding, relu, residual=None):
    """x: NHWC bf16 (channels already lane-padded).  p: pre-reshaped params."""
    w2d, scale, bias, k = p['w2d'], p['scale'], p['bias'], p['k']
    K, cout = w2d.shape
    N, H, W, Cin = x.shape
    assert k * k * Cin == K, (k, Cin, K)
    oh = (H + 2 * padding - k) // stride + 1
    ow = (W + 2 * padding - k) // stride + 1

    # im2col glue in plain JAX (tap-major, channel-minor -> matches w reshape).
    xp = jnp.pad(x, ((0, 0), (padding, padding), (padding, padding), (0, 0)))
    cols = []
    for dy in range(k):
        for dx in range(k):
            cols.append(xp[:, dy:dy + stride * (oh - 1) + 1:stride,
                           dx:dx + stride * (ow - 1) + 1:stride, :])
    A = jnp.concatenate(cols, axis=-1).reshape(N * oh * ow, K)

    res2d = None
    if residual is not None:
        res2d = residual.reshape(N * oh * ow, cout)

    out2d = _gemm_bn(A, w2d, scale, bias, relu, res2d)
    return out2d.reshape(N, oh, ow, cout)


def _max_over_taps(stacked):
    """stacked: (T, M, C) -> (M, C) elementwise max over taps, tiled over M."""
    T, M, C = stacked.shape
    tm = _pick_tm(M)
    Mp = _round_up(M, tm)
    if Mp != M:
        stacked = jnp.pad(stacked, ((0, 0), (0, Mp - M), (0, 0)))
    out = pl.pallas_call(
        _maxpool_kernel,
        grid=(Mp // tm,),
        in_specs=[pl.BlockSpec((T, tm, C), lambda i: (0, i, 0))],
        out_specs=pl.BlockSpec((tm, C), lambda i: (i, 0)),
        out_shape=jax.ShapeDtypeStruct((Mp, C), stacked.dtype),
        compiler_params=pltpu.CompilerParams(
            dimension_semantics=("parallel",),
            vmem_limit_bytes=_vmem_limit()),
    )(stacked)
    return out[:M] if Mp != M else out


def maxpool_3x3_s2(x):
    """PyTorch MaxPool2d(kernel=3, stride=2, padding=1), NHWC, separable."""
    N, H, W, C = x.shape
    k, s, pad = 3, 2, 1
    oh = (H + 2 * pad - k) // s + 1
    ow = (W + 2 * pad - k) // s + 1
    Hp = H + 2 * pad
    xp = jnp.pad(x, ((0, 0), (pad, pad), (pad, pad), (0, 0)),
                 constant_values=-jnp.inf)

    # Stage 1: max over the 3 horizontal taps (stride 2 along W).
    cols = [xp[:, :, dx:dx + s * (ow - 1) + 1:s, :] for dx in range(k)]
    st1 = jnp.stack(cols, axis=0).reshape(k, N * Hp * ow, C)
    m1 = _max_over_taps(st1).reshape(N, Hp, ow, C)

    # Stage 2: max over the 3 vertical taps (stride 2 along H).
    rows = [m1[:, dy:dy + s * (oh - 1) + 1:s, :, :] for dy in range(k)]
    st2 = jnp.stack(rows, axis=0).reshape(k, N * oh * ow, C)
    m2 = _max_over_taps(st2).reshape(N, oh, ow, C)
    return m2


# ------------------------------- parameters -------------------------------- #

class ParamGen:
    def __init__(self, seed=0):
        self.key = jax.random.PRNGKey(seed)
        self.count = 0

    def normal(self, shape):
        self.count += 1
        return jax.random.normal(jax.random.fold_in(self.key, self.count),
                                 shape, jnp.float32)


def conv_bn_params(gen, cin, cout, k):
    """Generates logical conv+BN params, folds BN, pads channels to lane-dense
    physical sizes and pre-reshapes/pre-casts to the kernel's final layout."""
    cin_phys = cin if cin == 3 else _round_c(cin)
    cout_phys = _round_c(cout)

    fan_in = k * k * cin
    w = gen.normal((k, k, cin, cout)) * (1.0 / jnp.sqrt(jnp.float32(fan_in)))
    gamma = 1.0 + 0.1 * gen.normal((cout,))
    beta = 0.1 * gen.normal((cout,))
    mean = 0.1 * gen.normal((cout,))
    var = 1.0 + 0.1 * jnp.abs(gen.normal((cout,)))
    eps = 1e-5
    scale = gamma / jnp.sqrt(var + eps)
    bias = beta - mean * scale

    # Zero-pad input/output channels to physical sizes (exact for logical ch).
    w = jnp.pad(w, ((0, 0), (0, 0), (0, cin_phys - cin), (0, cout_phys - cout)))
    scale = jnp.pad(scale, (0, cout_phys - cout))
    bias = jnp.pad(bias, (0, cout_phys - cout))

    return {
        'w2d': w.reshape(k * k * cin_phys, cout_phys).astype(jnp.bfloat16),
        'scale': scale.reshape(1, cout_phys).astype(jnp.float32),
        'bias': bias.reshape(1, cout_phys).astype(jnp.float32),
        'k': k,
    }


def make_layer_params(gen, cin, cout, stride):
    blocks = []
    b1 = {'conv1': conv_bn_params(gen, cin, cout, 3),
          'conv2': conv_bn_params(gen, cout, cout, 3)}
    if stride != 1 or cin != cout:
        b1['down'] = conv_bn_params(gen, cin, cout, 1)
    blocks.append((b1, stride))
    b2 = {'conv1': conv_bn_params(gen, cout, cout, 3),
          'conv2': conv_bn_params(gen, cout, cout, 3)}
    blocks.append((b2, 1))
    return blocks


def init_params(seed=0):
    gen = ParamGen(seed)
    return {
        'initial': conv_bn_params(gen, 3, 64, 7),     # conv1 7x7 s2 p3 + bn + relu
        'layer1': make_layer_params(gen, 64, 64, 1),
        'layer2': make_layer_params(gen, 64, 128, 2),
        'layer3': make_layer_params(gen, 128, 256, 2),
        'layer4': make_layer_params(gen, 256, 512, 2),
    }


# --------------------------------- forward --------------------------------- #

def basic_block(x, p, stride):
    out = conv_bn(x, p['conv1'], stride=stride, padding=1, relu=True)
    if 'down' in p:
        identity = conv_bn(x, p['down'], stride=stride, padding=0, relu=False)
    else:
        identity = x
    # second conv: BN + residual add + ReLU fused in the GEMM epilogue
    out = conv_bn(out, p['conv2'], stride=1, padding=1, relu=True,
                  residual=identity)
    return out


def run_layer(x, layer_params):
    for block_p, stride in layer_params:
        x = basic_block(x, block_p, stride)
    return x


def resnet_encoder_forward(x_nchw, params):
    """Matches ResNetEncoder.forward: returns [x0, x2, x3, x4, x5] in NCHW f32."""
    x = jnp.transpose(x_nchw, (0, 2, 3, 1)).astype(jnp.bfloat16)  # NCHW -> NHWC
    x0 = conv_bn(x, params['initial'], stride=2, padding=3, relu=True)
    x1 = maxpool_3x3_s2(x0)
    x2 = run_layer(x1, params['layer1'])
    x3 = run_layer(x2, params['layer2'])
    x4 = run_layer(x3, params['layer3'])
    x5 = run_layer(x4, params['layer4'])

    def fin(t, c_logical):  # strip lane padding, back to NCHW f32
        return jnp.transpose(t[..., :c_logical], (0, 3, 1, 2)).astype(jnp.float32)

    return [fin(x0, 64), fin(x2, 64), fin(x3, 128), fin(x4, 256), fin(x5, 512)]


if __name__ == "__main__":
    key = jax.random.PRNGKey(0)
    x = jax.random.normal(key, (2, 3, 32, 32), jnp.float32)   # small NCHW input
    params = init_params(seed=0)

    outs = resnet_encoder_forward(x, params)
    outs = jax.block_until_ready(outs)

    expected = [(2, 64, 16, 16), (2, 64, 8, 8), (2, 128, 4, 4),
                (2, 256, 2, 2), (2, 512, 1, 1)]
    assert [tuple(o.shape) for o in outs] == expected
    assert all(bool(jnp.isfinite(o).all()) for o in outs)
    print("KERNEL_OK")
</pallas_src>

<mosaic_0001>
module attributes {stable_mosaic.version = 11 : i64} {
  func.func @_gemm_bn_kernel(%arg0: i32, %arg1: i32, %arg2: memref<512x147xbf16, #tpu.memory_space<vmem>>, %arg3: memref<147x128xbf16, #tpu.memory_space<vmem>>, %arg4: memref<1x128xf32, #tpu.memory_space<vmem>>, %arg5: memref<1x128xf32, #tpu.memory_space<vmem>>, %arg6: memref<512x128xbf16, #tpu.memory_space<vmem>>, %arg7: memref<512x128xf32, #tpu.memory_space<vmem>>) attributes {dimension_semantics = [#tpu.dimension_semantics<parallel>, #tpu.dimension_semantics<arbitrary>], iteration_bounds = array<i64: 1, 1>, scalar_prefetch = 0 : i64, scratch_operands = 1 : i64, tpu.core_type = #tpu.core_type<tc>, window_params = [{transform_indices = @transform_0, window_bounds = array<i64: 512, 147>}, {transform_indices = @transform_1, window_bounds = array<i64: 147, 128>}, {pipeline_mode = #tpu.pipeline_mode<synchronous>, transform_indices = @transform_2, window_bounds = array<i64: 1, 128>}, {pipeline_mode = #tpu.pipeline_mode<synchronous>, transform_indices = @transform_3, window_bounds = array<i64: 1, 128>}, {transform_indices = @transform_4, window_bounds = array<i64: 512, 128>}]} {
    %c0_i32 = arith.constant 0 : i32
    %0 = arith.cmpi eq, %arg1, %c0_i32 : i32
    %1 = arith.extui %0 : i1 to i32
    %c0_i32_0 = arith.constant 0 : i32
    %2 = arith.cmpi ne, %1, %c0_i32_0 : i32
    scf.if %2 {
      %cst_10 = arith.constant 0.000000e+00 : f32
      %12 = vector.broadcast %cst_10 : f32 to vector<512x128xf32>
      %c0_11 = arith.constant 0 : index
      %c0_12 = arith.constant 0 : index
      %13 = vector.load %arg7[%c0_11, %c0_12] : memref<512x128xf32, #tpu.memory_space<vmem>>, vector<512x128xf32>
      tpu.vector_store %arg7[%c0_11, %c0_12], %12 {strides = array<i32>} : memref<512x128xf32, #tpu.memory_space<vmem>>, vector<512x128xf32>,
    } else {
    }
    %c0 = arith.constant 0 : index
    %c0_1 = arith.constant 0 : index
    %3 = vector.load %arg7[%c0, %c0_1] : memref<512x128xf32, #tpu.memory_space<vmem>>, vector<512x128xf32>
    %c0_2 = arith.constant 0 : index
    %c0_3 = arith.constant 0 : index
    %4 = vector.load %arg2[%c0_2, %c0_3] : memref<512x147xbf16, #tpu.memory_space<vmem>>, vector<512x147xbf16>
    %c0_4 = arith.constant 0 : index
    %c0_5 = arith.constant 0 : index
    %5 = vector.load %arg3[%c0_4, %c0_5] : memref<147x128xbf16, #tpu.memory_space<vmem>>, vector<147x128xbf16>
    %cst = arith.constant dense<0.000000e+00> : vector<512x128xf32>
    %6 = tpu.matmul %4, %5, %cst {dimension_numbers = #tpu.dot_dimension_numbers<[1], [0], [0], [1], [0, 0, 1, 1], [], []>} : vector<512x147xbf16>, vector<147x128xbf16>, vector<512x128xf32> -> vector<512x128xf32>
    %7 = arith.addf %3, %6 : vector<512x128xf32>
    %c0_6 = arith.constant 0 : index
    %c0_7 = arith.constant 0 : index
    %8 = vector.load %arg7[%c0_6, %c0_7] : memref<512x128xf32, #tpu.memory_space<vmem>>, vector<512x128xf32>
    tpu.vector_store %arg7[%c0_6, %c0_7], %7 {strides = array<i32>} : memref<512x128xf32, #tpu.memory_space<vmem>>, vector<512x128xf32>,
    %c0_i32_8 = arith.constant 0 : i32
    %9 = arith.cmpi eq, %arg1, %c0_i32_8 : i32
    %10 = arith.extui %9 : i1 to i32
    %c0_i32_9 = arith.constant 0 : i32
    %11 = arith.cmpi ne, %10, %c0_i32_9 : i32
    scf.if %11 {
      %c0_10 = arith.constant 0 : index
      %c0_11 = arith.constant 0 : index
      %12 = vector.load %arg7[%c0_10, %c0_11] : memref<512x128xf32, #tpu.memory_space<vmem>>, vector<512x128xf32>
      %c0_12 = arith.constant 0 : index
      %c0_13 = arith.constant 0 : index
      %13 = vector.load %arg4[%c0_12, %c0_13] : memref<1x128xf32, #tpu.memory_space<vmem>>, vector<1x128xf32>
      %14 = vector.broadcast %13 : vector<1x128xf32> to vector<512x128xf32>
      %15 = arith.mulf %12, %14 : vector<512x128xf32>
      %c0_14 = arith.constant 0 : index
      %c0_15 = arith.constant 0 : index
      %16 = vector.load %arg5[%c0_14, %c0_15] : memref<1x128xf32, #tpu.memory_space<vmem>>, vector<1x128xf32>
      %17 = vector.broadcast %16 : vector<1x128xf32> to vector<512x128xf32>
      %18 = arith.addf %15, %17 : vector<512x128xf32>
      %cst_16 = arith.constant 0.000000e+00 : f32
      %19 = vector.broadcast %cst_16 : f32 to vector<512x128xf32>
      %20 = arith.maximumf %18, %19 : vector<512x128xf32>
      %21 = arith.truncf %20 : vector<512x128xf32> to vector<512x128xbf16>
      %c0_17 = arith.constant 0 : index
      %c0_18 = arith.constant 0 : index
      %22 = vector.load %arg6[%c0_17, %c0_18] : memref<512x128xbf16, #tpu.memory_space<vmem>>, vector<512x128xbf16>
      tpu.vector_store %arg6[%c0_17, %c0_18], %21 {strides = array<i32>} : memref<512x128xbf16, #tpu.memory_space<vmem>>, vector<512x128xbf16>,
    } else {
    }
    return
  }
  func.func @transform_0(%arg0: i32, %arg1: i32) -> (i32, i32) {
    %c0_i32 = arith.constant 0 : i32
    return %arg0, %arg1 : i32, i32
  }
  func.func @transform_1(%arg0: i32, %arg1: i32) -> (i32, i32) {
    %c0_i32 = arith.constant 0 : i32
    %c0_i32_0 = arith.constant 0 : i32
    return %arg1, %c0_i32 : i32, i32
  }
  func.func @transform_2(%arg0: i32, %arg1: i32) -> (i32, i32) {
    %c0_i32 = arith.constant 0 : i32
    %c0_i32_0 = arith.constant 0 : i32
    %c0_i32_1 = arith.constant 0 : i32
    return %c0_i32, %c0_i32_0 : i32, i32
  }
  func.func @transform_3(%arg0: i32, %arg1: i32) -> (i32, i32) {
    %c0_i32 = arith.constant 0 : i32
    %c0_i32_0 = arith.constant 0 : i32
    %c0_i32_1 = arith.constant 0 : i32
    return %c0_i32, %c0_i32_0 : i32, i32
  }
  func.func @transform_4(%arg0: i32, %arg1: i32) -> (i32, i32) {
    %c0_i32 = arith.constant 0 : i32
    %c0_i32_0 = arith.constant 0 : i32
    return %arg0, %c0_i32 : i32, i32
  }
}

</mosaic_0001>

<bundles_post_ra>
// kernel: tpu_custom_call.1
= control target key start
LH: loop header
LB: loop body
LE: loop exit
PB: predicated region body
PF: predicated region fallthrough
CT: control target
= control target key end

     0   :  { %v2289_v1 = vmov 0   ;;  %vm579_vm0 = vcmask 154624   ;;  %vm676_vm1 = vcmask 1040384   ;;  %vm677_vm2 = vcmask 1041408   ;;  %s2714_s0 = inlined_call_operand.vmem [shape: bf16[512,147], index: 0, kind: input, shape index: {}]   ;;  %s2715_s1 = inlined_call_operand.vmem [shape: bf16[147,128], index: 1, kind: input, shape index: {}]   ;;  %s2716_s2 = inlined_call_operand.vmem [shape: f32[1,128], index: 2, kind: input, shape index: {}]   ;;  %s2717_s3 = inlined_call_operand.vmem [shape: f32[1,128], index: 3, kind: input, shape index: {}]   ;;  %s2718_s4 = inlined_call_operand.hbm [shape: bf16[512,128], index: 4, kind: output, shape index: {}]  }
   0x1   :  { %v2161_v0 = vld [vmem:[%s2715_s1 + $0x38] sm:$0xff]   ;;  %683 = vmatprep.subr.bf16.mxu0 %v2289_v1  ;;  %2136 = vmatprep.subr.bf16.mxu1 %v2289_v1  ;;  %v2162_v2 = vld [vmem:[%s2715_s1 + $0x30] sm:$0xff]   ;;  %v2163_v3 = vld [vmem:[%s2715_s1 + $0x28] sm:$0xff]   ;;  %v2290_v10 = vmov 65535  }
   0x2   :  { %684 = vmatpush1.bf16.msra.mxu0 %v2161_v0  ;;  %2146 = vmatpush1.bf16.msra.mxu1 %v2161_v0  ;;  %v2164_v4 = vld [vmem:[%s2715_s1 + $0x20] sm:$0xff]   ;;  %v2165_v7 = vld [vmem:[%s2715_s1 + $0x18] sm:$0xff]   ;;  %v2166_v8 = vld [vmem:[%s2715_s1 + $0x10] sm:$0xff]   ;;  %v678_v11 = vsel %vm676_vm1, 4294967295, %v2290_v10 }
   0x3   :  { %685 = vmatprep.subr.bf16.mxu0 %v2289_v1  ;;  %2137 = vmatprep.subr.bf16.mxu1 %v2289_v1  ;;  %v2173_v5 = vld [vmem:[%s2714_s0 + $0x4] ss:$8 sps:$4 sm:$0xff]   ;;  %v2169_v13 = vld [vmem:[%s2715_s1 + $0x48] ss:$0 sps:$4 sm:$0x33]   ;;  %v679_v14 = vsel %vm677_vm2, %v678_v11, 0 }
   0x4   :  { %1783 = vmatprep.mubr.msk.bf16.mxu0 %vm579_vm0, %v2173_v5  ;;  %v2176_v6 = vld [vmem:[%s2714_s0 + $0x104] ss:$8 sps:$4 sm:$0xff]   ;;  %v681_v15 = vand.u32 %v2169_v13, %v679_v14  ;;  %v2171_v17 = vld [vmem:[%s2714_s0] ss:$8 sps:$4 sm:$0xff]   ;;  %v2177_v19 = vld [vmem:[%s2714_s0 + $0x14] ss:$8 sps:$4 sm:$0xff]  }
   0x5   :  { %1799 = vmatprep.mubr.msk.bf16.mxu1 %vm579_vm0, %v2176_v6  ;;  %v2167_v9 = vld [vmem:[%s2715_s1 + $0x8] sm:$0xff]   ;;  %v2168_v12 = vld [vmem:[%s2715_s1] sm:$0xff]   ;;  %v2179_v20 = vld [vmem:[%s2714_s0 + $0x114] ss:$8 sps:$4 sm:$0xff]  }
   0x6   :  { %686 = vmatpush1.bf16.msra.mxu0 %v2162_v2  ;;  %2147 = vmatpush1.bf16.msra.mxu1 %v2162_v2  ;;  %v2170_v16 = vld [vmem:[%s2715_s1 + $0x40] sm:$0xff]   ;;  %v2181_v21 = vld [vmem:[%s2714_s0 + $0x10] ss:$8 sps:$4 sm:$0xff]  }
   0x7   :  { %687 = vmatprep.subr.bf16.mxu0 %v2289_v1  ;;  %2138 = vmatprep.subr.bf16.mxu1 %v2289_v1  ;;  %v2174_v18 = vld [vmem:[%s2714_s0 + $0x100] ss:$8 sps:$4 sm:$0xff]   ;;  %v2182_v22 = vld [vmem:[%s2714_s0 + $0x110] ss:$8 sps:$4 sm:$0xff]   ;;  %v2183_v23 = vld [vmem:[%s2714_s0 + $0x24] ss:$8 sps:$4 sm:$0xff]  }
   0x8   :  { %v2185_v24 = vld [vmem:[%s2714_s0 + $0x124] ss:$8 sps:$4 sm:$0xff]  }
   0xa   :  { %688 = vmatpush1.bf16.msra.mxu0 %v2163_v3  ;;  %2148 = vmatpush1.bf16.msra.mxu1 %v2163_v3 }
   0xb   :  { %689 = vmatprep.subr.bf16.mxu0 %v2289_v1  ;;  %2139 = vmatprep.subr.bf16.mxu1 %v2289_v1 }
   0xe   :  { %690 = vmatpush1.bf16.msra.mxu0 %v2164_v4  ;;  %2149 = vmatpush1.bf16.msra.mxu1 %v2164_v4 }
   0xf   :  { %691 = vmatprep.subr.bf16.mxu0 %v2289_v1  ;;  %2140 = vmatprep.subr.bf16.mxu1 %v2289_v1 }
  0x12   :  { %692 = vmatpush1.bf16.msra.mxu0 %v2165_v7  ;;  %2150 = vmatpush1.bf16.msra.mxu1 %v2165_v7 }
  0x13   :  { %693 = vmatprep.subr.bf16.mxu0 %v2289_v1  ;;  %2141 = vmatprep.subr.bf16.mxu1 %v2289_v1 }
  0x16   :  { %694 = vmatpush1.bf16.msra.mxu0 %v2166_v8  ;;  %2151 = vmatpush1.bf16.msra.mxu1 %v2166_v8 }
  0x17   :  { %695 = vmatprep.subr.bf16.mxu0 %v2289_v1  ;;  %2142 = vmatprep.subr.bf16.mxu1 %v2289_v1 }
  0x1a   :  { %696 = vmatpush1.bf16.msra.mxu0 %v2167_v9  ;;  %2152 = vmatpush1.bf16.msra.mxu1 %v2167_v9 }
  0x1b   :  { %697 = vmatprep.subr.bf16.mxu0 %v2289_v1  ;;  %2143 = vmatprep.subr.bf16.mxu1 %v2289_v1 }
  0x1e   :  { %698 = vmatpush1.bf16.msra.mxu0 %v2168_v12  ;;  %2153 = vmatpush1.bf16.msra.mxu1 %v2168_v12 }
  0x1f   :  { %711 = vmatprep.subr.bf16.mxu0 %v2289_v1  ;;  %2144 = vmatprep.subr.bf16.mxu1 %v2289_v1 }
  0x22   :  { %712 = vmatpush2.bf16.msra.mxu0 %v681_v15  ;;  %2154 = vmatpush2.bf16.msra.mxu1 %v681_v15 }
  0x23   :  { %713 = vmatprep.subr.bf16.mxu0 %v2289_v1  ;;  %2145 = vmatprep.subr.bf16.mxu1 %v2289_v1 }
  0x26   :  { %714 = vmatpush2.bf16.msra.mxu0 %v2170_v16  ;;  %2155 = vmatpush2.bf16.msra.mxu1 %v2170_v16 }
  0x29   :  { %716 = vmatmul.mubr.bf16.vlgmr.msra.gmra.mxu0 %v2171_v17  ;;  %844 = vmatmul.mubr.bf16.vlgmr.msra.gmra.mxu1 %v2174_v18 }
  0x2a   :  { %1784 = vmatprep.mubr.msk.bf16.mxu0 %vm579_vm0, %v2177_v19  ;;  %1800 = vmatprep.mubr.msk.bf16.mxu1 %vm579_vm0, %v2179_v20 }
  0x31   :  { %724 = vmatmul.mubr.bf16.gmra.mxu0 %v2181_v21  ;;  %852 = vmatmul.mubr.bf16.gmra.mxu1 %v2182_v22 }
  0x32   :  { %1785 = vmatprep.mubr.msk.bf16.mxu0 %vm579_vm0, %v2183_v23  ;;  %1801 = vmatprep.mubr.msk.bf16.mxu1 %vm579_vm0, %v2185_v24 }
  0x33   :  { %9 = vsyncpa [#allocation4], 0  ;;  %v2187_v25 = vld [vmem:[%s2714_s0 + $0x20] ss:$8 sps:$4 sm:$0xff]   ;;  %v2189_v27 = vld [vmem:[%s2714_s0 + $0x34] ss:$8 sps:$4 sm:$0xff]  }
  0x34   :  { %v2188_v26 = vld [vmem:[%s2714_s0 + $0x120] ss:$8 sps:$4 sm:$0xff]   ;;  %v2191_v28 = vld [vmem:[%s2714_s0 + $0x134] ss:$8 sps:$4 sm:$0xff]   ;;  %v2193_v29 = vld [vmem:[%s2714_s0 + $0x30] ss:$8 sps:$4 sm:$0xff]  }
  0x35   :  { %v2194_v30 = vld [vmem:[%s2714_s0 + $0x130] ss:$8 sps:$4 sm:$0xff]   ;;  %v2195_v31 = vld [vmem:[%s2714_s0 + $0x44] ss:$8 sps:$4 sm:$0xff]   ;;  %v2199_v33 = vld [vmem:[%s2714_s0 + $0x40] ss:$8 sps:$4 sm:$0xff]  }
  0x36   :  { %v2197_v32 = vld [vmem:[%s2714_s0 + $0x144] ss:$8 sps:$4 sm:$0xff]   ;;  %v2200_v34 = vld [vmem:[%s2714_s0 + $0x140] ss:$8 sps:$4 sm:$0xff]   ;;  %v2201_v35 = vld [vmem:[%s2714_s0 + $0x54] ss:$8 sps:$4 sm:$0xff]  }
  0x37   :  { %v2203_v36 = vld [vmem:[%s2714_s0 + $0x154] ss:$8 sps:$4 sm:$0xff]   ;;  %v2205_v37 = vld [vmem:[%s2714_s0 + $0x50] ss:$8 sps:$4 sm:$0xff]   ;;  %v2207_v39 = vld [vmem:[%s2714_s0 + $0x64] ss:$8 sps:$4 sm:$0xff]  }
  0x38   :  { %v2206_v38 = vld [vmem:[%s2714_s0 + $0x150] ss:$8 sps:$4 sm:$0xff]   ;;  %v2209_v40 = vld [vmem:[%s2714_s0 + $0x164] ss:$8 sps:$4 sm:$0xff]   ;;  %v2211_v41 = vld [vmem:[%s2714_s0 + $0x60] ss:$8 sps:$4 sm:$0xff]  }
  0x39   :  { %732 = vmatmul.mubr.bf16.gmra.mxu0 %v2187_v25  ;;  %860 = vmatmul.mubr.bf16.gmra.mxu1 %v2188_v26  ;;  %v2212_v42 = vld [vmem:[%s2714_s0 + $0x160] ss:$8 sps:$4 sm:$0xff]   ;;  %v2213_v43 = vld [vmem:[%s2714_s0 + $0x74] ss:$8 sps:$4 sm:$0xff]   ;;  %v2217_v45 = vld [vmem:[%s2714_s0 + $0x70] ss:$8 sps:$4 sm:$0xff]  }
  0x3a   :  { %1786 = vmatprep.mubr.msk.bf16.mxu0 %vm579_vm0, %v2189_v27  ;;  %1802 = vmatprep.mubr.msk.bf16.mxu1 %vm579_vm0, %v2191_v28  ;;  %v2215_v44 = vld [vmem:[%s2714_s0 + $0x174] ss:$8 sps:$4 sm:$0xff]   ;;  %v2218_v46 = vld [vmem:[%s2714_s0 + $0x170] ss:$8 sps:$4 sm:$0xff]   ;;  %v2219_v47 = vld [vmem:[%s2714_s0 + $0x84] ss:$8 sps:$4 sm:$0xff]  }
  0x3b   :  { %v2221_v48 = vld [vmem:[%s2714_s0 + $0x184] ss:$8 sps:$4 sm:$0xff]   ;;  %v2223_v49 = vld [vmem:[%s2714_s0 + $0x80] ss:$8 sps:$4 sm:$0xff]   ;;  %v2225_v51 = vld [vmem:[%s2714_s0 + $0x94] ss:$8 sps:$4 sm:$0xff]  }
  0x3c   :  { %v2224_v50 = vld [vmem:[%s2714_s0 + $0x180] ss:$8 sps:$4 sm:$0xff]   ;;  %v2227_v52 = vld [vmem:[%s2714_s0 + $0x194] ss:$8 sps:$4 sm:$0xff]   ;;  %v2229_v53 = vld [vmem:[%s2714_s0 + $0x90] ss:$8 sps:$4 sm:$0xff]  }
  0x3d   :  { %v2230_v54 = vld [vmem:[%s2714_s0 + $0x190] ss:$8 sps:$4 sm:$0xff]   ;;  %v2231_v55 = vld [vmem:[%s2714_s0 + $0xa4] ss:$8 sps:$4 sm:$0xff]   ;;  %v2235_v57 = vld [vmem:[%s2714_s0 + $0xa0] ss:$8 sps:$4 sm:$0xff]  }
  0x3e   :  { %v2233_v56 = vld [vmem:[%s2714_s0 + $0x1a4] ss:$8 sps:$4 sm:$0xff]   ;;  %v2236_v58 = vld [vmem:[%s2714_s0 + $0x1a0] ss:$8 sps:$4 sm:$0xff]   ;;  %v2237_v59 = vld [vmem:[%s2714_s0 + $0xb4] ss:$8 sps:$4 sm:$0xff]  }
  0x3f   :  { %v2239_v60 = vld [vmem:[%s2714_s0 + $0x1b4] ss:$8 sps:$4 sm:$0xff]   ;;  %v2241_v61 = vld [vmem:[%s2714_s0 + $0xb0] ss:$8 sps:$4 sm:$0xff]   ;;  %v2243_v63 = vld [vmem:[%s2714_s0 + $0xc4] ss:$8 sps:$4 sm:$0xff]  }
  0x40   :  { %v2242_v62 = vld [vmem:[%s2714_s0 + $0x1b0] ss:$8 sps:$4 sm:$0xff]   ;;  %v2245_v0 = vld [vmem:[%s2714_s0 + $0x1c4] ss:$8 sps:$4 sm:$0xff]   ;;  %v2247_v1 = vld [vmem:[%s2714_s0 + $0xc0] ss:$8 sps:$4 sm:$0xff]  }
  0x41   :  { %740 = vmatmul.mubr.bf16.gmra.mxu0 %v2193_v29  ;;  %868 = vmatmul.mubr.bf16.gmra.mxu1 %v2194_v30  ;;  %v2248_v2 = vld [vmem:[%s2714_s0 + $0x1c0] ss:$8 sps:$4 sm:$0xff]   ;;  %v2249_v3 = vld [vmem:[%s2714_s0 + $0xd4] ss:$8 sps:$4 sm:$0xff]   ;;  %v2253_v5 = vld [vmem:[%s2714_s0 + $0xd0] ss:$8 sps:$4 sm:$0xff]  }
  0x42   :  { %1787 = vmatprep.mubr.msk.bf16.mxu0 %vm579_vm0, %v2195_v31  ;;  %1803 = vmatprep.mubr.msk.bf16.mxu1 %vm579_vm0, %v2197_v32  ;;  %v2251_v4 = vld [vmem:[%s2714_s0 + $0x1d4] ss:$8 sps:$4 sm:$0xff]   ;;  %v2254_v6 = vld [vmem:[%s2714_s0 + $0x1d0] ss:$8 sps:$4 sm:$0xff]   ;;  %v2255_v7 = vld [vmem:[%s2714_s0 + $0xe4] ss:$8 sps:$4 sm:$0xff]  }
  0x43   :  { %v2257_v8 = vld [vmem:[%s2714_s0 + $0x1e4] ss:$8 sps:$4 sm:$0xff]   ;;  %v2259_v9 = vld [vmem:[%s2714_s0 + $0xe0] ss:$8 sps:$4 sm:$0xff]   ;;  %v2261_v11 = vld [vmem:[%s2714_s0 + $0xf4] ss:$8 sps:$4 sm:$0xff]  }
  0x44   :  { %v2260_v10 = vld [vmem:[%s2714_s0 + $0x1e0] ss:$8 sps:$4 sm:$0xff]   ;;  %v2263_v12 = vld [vmem:[%s2714_s0 + $0x1f4] ss:$8 sps:$4 sm:$0xff]   ;;  %v2265_v13 = vld [vmem:[%s2714_s0 + $0xf0] ss:$8 sps:$4 sm:$0xff]  }
  0x45   :  { %v2266_v14 = vld [vmem:[%s2714_s0 + $0x1f0] ss:$8 sps:$4 sm:$0xff]   ;;  %v2576_v15 = vld [vmem:[%s2716_s2] ss:$0 sm:$0xff]  ;;  %s2291_s0 = smov [#allocation3]  }
  0x46   :  { %v2582_v19 = vld [vmem:[%s2717_s3] ss:$0 sm:$0xff]  ;;  %s1698_s2 = sshll.u32 %s2291_s0, 4  ;;  %s1699_s2 = int_to_ptr.vmem [resolvable:$true] %s1698_s2 }
  0x47   :  { %s2267_s3 = scalar_lea.vmem %s1699_s2, 4096  ;;  %p2272_p1 = scmp.lt.s32.totalorder %s1699_s2, %s1699_s2 }
  0x48   :  { %p2268_p0 = scmp.ne.s32.totalorder %s1699_s2, %s2267_s3  ;;  %p2273_p2 = scmp.lt.s32.totalorder %s2267_s3, %s2267_s3 }
  0x49   :  { %748 = vmatmul.mubr.bf16.gmra.mxu0 %v2199_v33  ;;  %876 = vmatmul.mubr.bf16.gmra.mxu1 %v2200_v34 }
  0x4a   :  { %1788 = vmatprep.mubr.msk.bf16.mxu0 %vm579_vm0, %v2201_v35  ;;  %1804 = vmatprep.mubr.msk.bf16.mxu1 %vm579_vm0, %v2203_v36  ;;  %p2274_p3 = por %p2273_p2, %p2272_p1 }
  0x4c   :  { %p2275_p4 = pnand %p2274_p3, %p2268_p0 }
  0x51   :  { %756 = vmatmul.mubr.bf16.gmra.mxu0 %v2205_v37  ;;  %884 = vmatmul.mubr.bf16.gmra.mxu1 %v2206_v38 }
  0x52   :  { %1789 = vmatprep.mubr.msk.bf16.mxu0 %vm579_vm0, %v2207_v39  ;;  %1805 = vmatprep.mubr.msk.bf16.mxu1 %vm579_vm0, %v2209_v40 }
  0x59   :  { %764 = vmatmul.mubr.bf16.gmra.mxu0 %v2211_v41  ;;  %892 = vmatmul.mubr.bf16.gmra.mxu1 %v2212_v42 }
  0x5a   :  { %1790 = vmatprep.mubr.msk.bf16.mxu0 %vm579_vm0, %v2213_v43  ;;  %1806 = vmatprep.mubr.msk.bf16.mxu1 %vm579_vm0, %v2215_v44 }
  0x61   :  { %772 = vmatmul.mubr.bf16.gmra.mxu0 %v2217_v45  ;;  %900 = vmatmul.mubr.bf16.gmra.mxu1 %v2218_v46 }
  0x62   :  { %1791 = vmatprep.mubr.msk.bf16.mxu0 %vm579_vm0, %v2219_v47  ;;  %1807 = vmatprep.mubr.msk.bf16.mxu1 %vm579_vm0, %v2221_v48 }
  0x69   :  { %780 = vmatmul.mubr.bf16.gmra.mxu0 %v2223_v49  ;;  %908 = vmatmul.mubr.bf16.gmra.mxu1 %v2224_v50 }
  0x6a   :  { %1792 = vmatprep.mubr.msk.bf16.mxu0 %vm579_vm0, %v2225_v51  ;;  %1808 = vmatprep.mubr.msk.bf16.mxu1 %vm579_vm0, %v2227_v52 }
  0x71   :  { %788 = vmatmul.mubr.bf16.gmra.mxu0 %v2229_v53  ;;  %916 = vmatmul.mubr.bf16.gmra.mxu1 %v2230_v54 }
  0x72   :  { %1793 = vmatprep.mubr.msk.bf16.mxu0 %vm579_vm0, %v2231_v55  ;;  %1809 = vmatprep.mubr.msk.bf16.mxu1 %vm579_vm0, %v2233_v56 }
  0x79   :  { %796 = vmatmul.mubr.bf16.gmra.mxu0 %v2235_v57  ;;  %924 = vmatmul.mubr.bf16.gmra.mxu1 %v2236_v58 }
  0x7a   :  { %1794 = vmatprep.mubr.msk.bf16.mxu0 %vm579_vm0, %v2237_v59  ;;  %1810 = vmatprep.mubr.msk.bf16.mxu1 %vm579_vm0, %v2239_v60 }
  0x81   :  { %804 = vmatmul.mubr.bf16.gmra.mxu0 %v2241_v61  ;;  %932 = vmatmul.mubr.bf16.gmra.mxu1 %v2242_v62 }
  0x82   :  { %1795 = vmatprep.mubr.msk.bf16.mxu0 %vm579_vm0, %v2243_v63  ;;  %1811 = vmatprep.mubr.msk.bf16.mxu1 %vm579_vm0, %v2245_v0 }
  0x89   :  { %812 = vmatmul.mubr.bf16.gmra.mxu0 %v2247_v1  ;;  %940 = vmatmul.mubr.bf16.gmra.mxu1 %v2248_v2 }
  0x8a   :  { %1796 = vmatprep.mubr.msk.bf16.mxu0 %vm579_vm0, %v2249_v3  ;;  %1812 = vmatprep.mubr.msk.bf16.mxu1 %vm579_vm0, %v2251_v4 }
  0x91   :  { %820 = vmatmul.mubr.bf16.gmra.mxu0 %v2253_v5  ;;  %948 = vmatmul.mubr.bf16.gmra.mxu1 %v2254_v6 }
  0x92   :  { %1797 = vmatprep.mubr.msk.bf16.mxu0 %vm579_vm0, %v2255_v7  ;;  %1813 = vmatprep.mubr.msk.bf16.mxu1 %vm579_vm0, %v2257_v8 }
  0x99   :  { %828 = vmatmul.mubr.bf16.gmra.mxu0 %v2259_v9  ;;  %956 = vmatmul.mubr.bf16.gmra.mxu1 %v2260_v10 }
  0x9a   :  { %1798 = vmatprep.mubr.msk.bf16.mxu0 %vm579_vm0, %v2261_v11  ;;  %1814 = vmatprep.mubr.msk.bf16.mxu1 %vm579_vm0, %v2263_v12 }
  0xa1   :  { %836 = vmatmul.mubr.bf16.gmra.mxu0 %v2265_v13  ;;  %964 = vmatmul.mubr.bf16.gmra.mxu1 %v2266_v14 }
  0xe9   :  { %v717_v16 = vpop.f32.mrf.mxu0  ;;  %v845_v17 = vpop.f32.mrf.mxu1 }
  0xea   :  { %v1174_v18 = vmul.f32 %v2576_v15, %v717_v16  ;;  %v1206_v20 = vmul.f32 %v2576_v15, %v845_v17 }
  0xeb   :  { %v719_v21 = vpop.f32.mrf.mxu0  ;;  %v847_v22 = vpop.f32.mrf.mxu1 }
  0xec   :  { %v1245_v23 = vadd.f32 %v2582_v19, %v1174_v18  ;;  %v1277_v24 = vadd.f32 %v2582_v19, %v1206_v20 }
  0xed   :  { %v720_v25 = vpop.f32.mrf.mxu0  ;;  %v848_v26 = vpop.f32.mrf.mxu1 }
  0xee   :  { %v1175_v27 = vmul.f32 %v2576_v15, %v720_v25  ;;  %v1207_v28 = vmul.f32 %v2576_v15, %v848_v26  ;;  %v1309_v33 = vmax.f32 %v1245_v23, 0.0  ;;  %v1341_v34 = vmax.f32 %v1277_v24, 0.0 }
  0xef   :  { %v722_v29 = vpop.f32.mrf.mxu0  ;;  %v850_v30 = vpop.f32.mrf.mxu1 }
  0xf0   :  { %v1246_v31 = vadd.f32 %v2582_v19, %v1175_v27  ;;  %v1278_v32 = vadd.f32 %v2582_v19, %v1207_v28 }
  0xf1   :  { %v725_v35 = vpop.f32.mrf.mxu0  ;;  %v853_v36 = vpop.f32.mrf.mxu1 }
  0xf2   :  { %v1310_v37 = vmax.f32 %v1246_v31, 0.0  ;;  %v1342_v38 = vmax.f32 %v1278_v32, 0.0  ;;  %v1176_v39 = vmul.f32 %v2576_v15, %v725_v35  ;;  %v1208_v40 = vmul.f32 %v2576_v15, %v853_v36 }
  0xf3   :  { %v727_v41 = vpop.f32.mrf.mxu0  ;;  %v855_v42 = vpop.f32.mrf.mxu1 }
  0xf4   :  { %v1948_v43 = vpack.c.bf16 %v1310_v37, %v1309_v33  ;;  %v2028_v44 = vpack.c.bf16 %v1342_v38, %v1341_v34  ;;  %v1247_v45 = vadd.f32 %v2582_v19, %v1176_v39  ;;  %v1279_v46 = vadd.f32 %v2582_v19, %v1208_v40 }
  0xf5   :  { %v728_v47 = vpop.f32.mrf.mxu0  ;;  %v856_v48 = vpop.f32.mrf.mxu1 }
  0xf6   :  { %1949 = vst [vmem:[#allocation3] sm:$0xff] %v1948_v43   ;;  %2120 = vst [vmem:[#allocation3 + $0x80] sm:$0xff] %v2028_v44   ;;  %v1177_v49 = vmul.f32 %v2576_v15, %v728_v47  ;;  %v1209_v50 = vmul.f32 %v2576_v15, %v856_v48  ;;  %v1311_v55 = vmax.f32 %v1247_v45, 0.0  ;;  %v1343_v56 = vmax.f32 %v1279_v46, 0.0 }
  0xf7   :  { %v730_v51 = vpop.f32.mrf.mxu0  ;;  %v858_v52 = vpop.f32.mrf.mxu1 }
  0xf8   :  { %v1248_v53 = vadd.f32 %v2582_v19, %v1177_v49  ;;  %v1280_v54 = vadd.f32 %v2582_v19, %v1209_v50 }
  0xf9   :  { %v733_v57 = vpop.f32.mrf.mxu0  ;;  %v861_v58 = vpop.f32.mrf.mxu1 }
  0xfa   :  { %v1312_v59 = vmax.f32 %v1248_v53, 0.0  ;;  %v1344_v60 = vmax.f32 %v1280_v54, 0.0  ;;  %v1178_v61 = vmul.f32 %v2576_v15, %v733_v57  ;;  %v1210_v62 = vmul.f32 %v2576_v15, %v861_v58 }
  0xfb   :  { %v735_v63 = vpop.f32.mrf.mxu0  ;;  %v863_v0 = vpop.f32.mrf.mxu1 }
  0xfc   :  { %v1953_v1 = vpack.c.bf16 %v1312_v59, %v1311_v55  ;;  %v2033_v2 = vpack.c.bf16 %v1344_v60, %v1343_v56  ;;  %v1249_v3 = vadd.f32 %v2582_v19, %v1178_v61  ;;  %v1281_v4 = vadd.f32 %v2582_v19, %v1210_v62 }
  0xfd   :  { %v736_v5 = vpop.f32.mrf.mxu0  ;;  %v864_v6 = vpop.f32.mrf.mxu1 }
  0xfe   :  { %2105 = vst [vmem:[#allocation3 + $0x8] sm:$0xff] %v1953_v1   ;;  %2121 = vst [vmem:[#allocation3 + $0x88] sm:$0xff] %v2033_v2   ;;  %v1179_v7 = vmul.f32 %v2576_v15, %v736_v5  ;;  %v1211_v8 = vmul.f32 %v2576_v15, %v864_v6  ;;  %v1313_v13 = vmax.f32 %v1249_v3, 0.0  ;;  %v1345_v14 = vmax.f32 %v1281_v4, 0.0 }
  0xff   :  { %v738_v9 = vpop.f32.mrf.mxu0  ;;  %v866_v10 = vpop.f32.mrf.mxu1 }
 0x100   :  { %v1250_v11 = vadd.f32 %v2582_v19, %v1179_v7  ;;  %v1282_v12 = vadd.f32 %v2582_v19, %v1211_v8 }
 0x101   :  { %v741_v16 = vpop.f32.mrf.mxu0  ;;  %v869_v17 = vpop.f32.mrf.mxu1 }
 0x102   :  { %v1314_v18 = vmax.f32 %v1250_v11, 0.0  ;;  %v1346_v20 = vmax.f32 %v1282_v12, 0.0  ;;  %v1180_v21 = vmul.f32 %v2576_v15, %v741_v16  ;;  %v1212_v22 = vmul.f32 %v2576_v15, %v869_v17 }
 0x103   :  { %v743_v23 = vpop.f32.mrf.mxu0  ;;  %v871_v24 = vpop.f32.mrf.mxu1 }
 0x104   :  { %v1958_v25 = vpack.c.bf16 %v1314_v18, %v1313_v13  ;;  %v2038_v26 = vpack.c.bf16 %v1346_v20, %v1345_v14  ;;  %v1251_v27 = vadd.f32 %v2582_v19, %v1180_v21  ;;  %v1283_v28 = vadd.f32 %v2582_v19, %v1212_v22 }
 0x105   :  { %v744_v29 = vpop.f32.mrf.mxu0  ;;  %v872_v30 = vpop.f32.mrf.mxu1 }
 0x106   :  { %2106 = vst [vmem:[#allocation3 + $0x10] sm:$0xff] %v1958_v25   ;;  %2122 = vst [vmem:[#allocation3 + $0x90] sm:$0xff] %v2038_v26   ;;  %v1181_v31 = vmul.f32 %v2576_v15, %v744_v29  ;;  %v1213_v32 = vmul.f32 %v2576_v15, %v872_v30  ;;  %v1315_v37 = vmax.f32 %v1251_v27, 0.0  ;;  %v1347_v38 = vmax.f32 %v1283_v28, 0.0 }
 0x107   :  { %v746_v33 = vpop.f32.mrf.mxu0  ;;  %v874_v34 = vpop.f32.mrf.mxu1 }
 0x108   :  { %v1252_v35 = vadd.f32 %v2582_v19, %v1181_v31  ;;  %v1284_v36 = vadd.f32 %v2582_v19, %v1213_v32 }
 0x109   :  { %v749_v39 = vpop.f32.mrf.mxu0  ;;  %v877_v40 = vpop.f32.mrf.mxu1 }
 0x10a   :  { %v1316_v41 = vmax.f32 %v1252_v35, 0.0  ;;  %v1348_v42 = vmax.f32 %v1284_v36, 0.0  ;;  %v1182_v43 = vmul.f32 %v2576_v15, %v749_v39  ;;  %v1214_v44 = vmul.f32 %v2576_v15, %v877_v40 }
 0x10b   :  { %v751_v45 = vpop.f32.mrf.mxu0  ;;  %v879_v46 = vpop.f32.mrf.mxu1 }
 0x10c   :  { %v1963_v47 = vpack.c.bf16 %v1316_v41, %v1315_v37  ;;  %v2043_v48 = vpack.c.bf16 %v1348_v42, %v1347_v38  ;;  %v1253_v49 = vadd.f32 %v2582_v19, %v1182_v43  ;;  %v1285_v50 = vadd.f32 %v2582_v19, %v1214_v44 }
 0x10d   :  { %v752_v51 = vpop.f32.mrf.mxu0  ;;  %v880_v52 = vpop.f32.mrf.mxu1 }
 0x10e   :  { %2107 = vst [vmem:[#allocation3 + $0x18] sm:$0xff] %v1963_v47   ;;  %2123 = vst [vmem:[#allocation3 + $0x98] sm:$0xff] %v2043_v48   ;;  %v1183_v53 = vmul.f32 %v2576_v15, %v752_v51  ;;  %v1215_v54 = vmul.f32 %v2576_v15, %v880_v52  ;;  %v1317_v59 = vmax.f32 %v1253_v49, 0.0  ;;  %v1349_v60 = vmax.f32 %v1285_v50, 0.0 }
 0x10f   :  { %v754_v55 = vpop.f32.mrf.mxu0  ;;  %v882_v56 = vpop.f32.mrf.mxu1 }
 0x110   :  { %v1254_v57 = vadd.f32 %v2582_v19, %v1183_v53  ;;  %v1286_v58 = vadd.f32 %v2582_v19, %v1215_v54 }
 0x111   :  { %v757_v61 = vpop.f32.mrf.mxu0  ;;  %v885_v62 = vpop.f32.mrf.mxu1 }
 0x112   :  { %v1318_v63 = vmax.f32 %v1254_v57, 0.0  ;;  %v1350_v0 = vmax.f32 %v1286_v58, 0.0  ;;  %v1184_v1 = vmul.f32 %v2576_v15, %v757_v61  ;;  %v1216_v2 = vmul.f32 %v2576_v15, %v885_v62 }
 0x113   :  { %v759_v3 = vpop.f32.mrf.mxu0  ;;  %v887_v4 = vpop.f32.mrf.mxu1 }
 0x114   :  { %v1968_v5 = vpack.c.bf16 %v1318_v63, %v1317_v59  ;;  %v2048_v6 = vpack.c.bf16 %v1350_v0, %v1349_v60  ;;  %v1255_v7 = vadd.f32 %v2582_v19, %v1184_v1  ;;  %v1287_v8 = vadd.f32 %v2582_v19, %v1216_v2 }
 0x115   :  { %v760_v9 = vpop.f32.mrf.mxu0  ;;  %v888_v10 = vpop.f32.mrf.mxu1 }
 0x116   :  { %2108 = vst [vmem:[#allocation3 + $0x20] sm:$0xff] %v1968_v5   ;;  %2124 = vst [vmem:[#allocation3 + $0xa0] sm:$0xff] %v2048_v6   ;;  %v1185_v11 = vmul.f32 %v2576_v15, %v760_v9  ;;  %v1217_v12 = vmul.f32 %v2576_v15, %v888_v10  ;;  %v1319_v18 = vmax.f32 %v1255_v7, 0.0  ;;  %v1351_v20 = vmax.f32 %v1287_v8, 0.0 }
 0x117   :  { %v762_v13 = vpop.f32.mrf.mxu0  ;;  %v890_v14 = vpop.f32.mrf.mxu1 }
 0x118   :  { %v1256_v16 = vadd.f32 %v2582_v19, %v1185_v11  ;;  %v1288_v17 = vadd.f32 %v2582_v19, %v1217_v12 }
 0x119   :  { %v765_v21 = vpop.f32.mrf.mxu0  ;;  %v893_v22 = vpop.f32.mrf.mxu1 }
 0x11a   :  { %v1320_v23 = vmax.f32 %v1256_v16, 0.0  ;;  %v1352_v24 = vmax.f32 %v1288_v17, 0.0  ;;  %v1186_v25 = vmul.f32 %v2576_v15, %v765_v21  ;;  %v1218_v26 = vmul.f32 %v2576_v15, %v893_v22 }
 0x11b   :  { %v767_v27 = vpop.f32.mrf.mxu0  ;;  %v895_v28 = vpop.f32.mrf.mxu1 }
 0x11c   :  { %v1973_v29 = vpack.c.bf16 %v1320_v23, %v1319_v18  ;;  %v2053_v30 = vpack.c.bf16 %v1352_v24, %v1351_v20  ;;  %v1257_v31 = vadd.f32 %v2582_v19, %v1186_v25  ;;  %v1289_v32 = vadd.f32 %v2582_v19, %v1218_v26 }
 0x11d   :  { %v768_v33 = vpop.f32.mrf.mxu0  ;;  %v896_v34 = vpop.f32.mrf.mxu1 }
 0x11e   :  { %2109 = vst [vmem:[#allocation3 + $0x28] sm:$0xff] %v1973_v29   ;;  %2125 = vst [vmem:[#allocation3 + $0xa8] sm:$0xff] %v2053_v30   ;;  %v1187_v35 = vmul.f32 %v2576_v15, %v768_v33  ;;  %v1219_v36 = vmul.f32 %v2576_v15, %v896_v34  ;;  %v1321_v41 = vmax.f32 %v1257_v31, 0.0  ;;  %v1353_v42 = vmax.f32 %v1289_v32, 0.0 }
 0x11f   :  { %v770_v37 = vpop.f32.mrf.mxu0  ;;  %v898_v38 = vpop.f32.mrf.mxu1 }
 0x120   :  { %v1258_v39 = vadd.f32 %v2582_v19, %v1187_v35  ;;  %v1290_v40 = vadd.f32 %v2582_v19, %v1219_v36 }
 0x121   :  { %v773_v43 = vpop.f32.mrf.mxu0  ;;  %v901_v44 = vpop.f32.mrf.mxu1 }
 0x122   :  { %v1322_v45 = vmax.f32 %v1258_v39, 0.0  ;;  %v1354_v46 = vmax.f32 %v1290_v40, 0.0  ;;  %v1188_v47 = vmul.f32 %v2576_v15, %v773_v43  ;;  %v1220_v48 = vmul.f32 %v2576_v15, %v901_v44 }
 0x123   :  { %v775_v49 = vpop.f32.mrf.mxu0  ;;  %v903_v50 = vpop.f32.mrf.mxu1 }
 0x124   :  { %v1978_v51 = vpack.c.bf16 %v1322_v45, %v1321_v41  ;;  %v2058_v52 = vpack.c.bf16 %v1354_v46, %v1353_v42  ;;  %v1259_v53 = vadd.f32 %v2582_v19, %v1188_v47  ;;  %v1291_v54 = vadd.f32 %v2582_v19, %v1220_v48 }
 0x125   :  { %v776_v55 = vpop.f32.mrf.mxu0  ;;  %v904_v56 = vpop.f32.mrf.mxu1 }
 0x126   :  { %2110 = vst [vmem:[#allocation3 + $0x30] sm:$0xff] %v1978_v51   ;;  %2126 = vst [vmem:[#allocation3 + $0xb0] sm:$0xff] %v2058_v52   ;;  %v1189_v57 = vmul.f32 %v2576_v15, %v776_v55  ;;  %v1221_v58 = vmul.f32 %v2576_v15, %v904_v56  ;;  %v1323_v63 = vmax.f32 %v1259_v53, 0.0  ;;  %v1355_v0 = vmax.f32 %v1291_v54, 0.0 }
 0x127   :  { %v778_v59 = vpop.f32.mrf.mxu0  ;;  %v906_v60 = vpop.f32.mrf.mxu1 }
 0x128   :  { %v1260_v61 = vadd.f32 %v2582_v19, %v1189_v57  ;;  %v1292_v62 = vadd.f32 %v2582_v19, %v1221_v58 }
 0x129   :  { %v781_v1 = vpop.f32.mrf.mxu0  ;;  %v909_v2 = vpop.f32.mrf.mxu1 }
 0x12a   :  { %v1324_v3 = vmax.f32 %v1260_v61, 0.0  ;;  %v1356_v4 = vmax.f32 %v1292_v62, 0.0  ;;  %v1190_v5 = vmul.f32 %v2576_v15, %v781_v1  ;;  %v1222_v6 = vmul.f32 %v2576_v15, %v909_v2 }
 0x12b   :  { %v783_v7 = vpop.f32.mrf.mxu0  ;;  %v911_v8 = vpop.f32.mrf.mxu1 }
 0x12c   :  { %v1983_v9 = vpack.c.bf16 %v1324_v3, %v1323_v63  ;;  %v2063_v10 = vpack.c.bf16 %v1356_v4, %v1355_v0  ;;  %v1261_v11 = vadd.f32 %v2582_v19, %v1190_v5  ;;  %v1293_v12 = vadd.f32 %v2582_v19, %v1222_v6 }
 0x12d   :  { %v784_v13 = vpop.f32.mrf.mxu0  ;;  %v912_v14 = vpop.f32.mrf.mxu1 }
 0x12e   :  { %2111 = vst [vmem:[#allocation3 + $0x38] sm:$0xff] %v1983_v9   ;;  %2127 = vst [vmem:[#allocation3 + $0xb8] sm:$0xff] %v2063_v10   ;;  %v1191_v16 = vmul.f32 %v2576_v15, %v784_v13  ;;  %v1223_v17 = vmul.f32 %v2576_v15, %v912_v14  ;;  %v1325_v23 = vmax.f32 %v1261_v11, 0.0  ;;  %v1357_v24 = vmax.f32 %v1293_v12, 0.0 }
 0x12f   :  { %v786_v18 = vpop.f32.mrf.mxu0  ;;  %v914_v20 = vpop.f32.mrf.mxu1 }
 0x130   :  { %v1262_v21 = vadd.f32 %v2582_v19, %v1191_v16  ;;  %v1294_v22 = vadd.f32 %v2582_v19, %v1223_v17 }
 0x131   :  { %v789_v25 = vpop.f32.mrf.mxu0  ;;  %v917_v26 = vpop.f32.mrf.mxu1 }
 0x132   :  { %v1326_v27 = vmax.f32 %v1262_v21, 0.0  ;;  %v1358_v28 = vmax.f32 %v1294_v22, 0.0  ;;  %v1192_v29 = vmul.f32 %v2576_v15, %v789_v25  ;;  %v1224_v30 = vmul.f32 %v2576_v15, %v917_v26 }
 0x133   :  { %v791_v31 = vpop.f32.mrf.mxu0  ;;  %v919_v32 = vpop.f32.mrf.mxu1 }
 0x134   :  { %v1988_v33 = vpack.c.bf16 %v1326_v27, %v1325_v23  ;;  %v2068_v34 = vpack.c.bf16 %v1358_v28, %v1357_v24  ;;  %v1263_v35 = vadd.f32 %v2582_v19, %v1192_v29  ;;  %v1295_v36 = vadd.f32 %v2582_v19, %v1224_v30 }
 0x135   :  { %v792_v37 = vpop.f32.mrf.mxu0  ;;  %v920_v38 = vpop.f32.mrf.mxu1 }
 0x136   :  { %2112 = vst [vmem:[#allocation3 + $0x40] sm:$0xff] %v1988_v33   ;;  %2128 = vst [vmem:[#allocation3 + $0xc0] sm:$0xff] %v2068_v34   ;;  %v1193_v39 = vmul.f32 %v2576_v15, %v792_v37  ;;  %v1225_v40 = vmul.f32 %v2576_v15, %v920_v38  ;;  %v1327_v45 = vmax.f32 %v1263_v35, 0.0  ;;  %v1359_v46 = vmax.f32 %v1295_v36, 0.0 }
 0x137   :  { %v794_v41 = vpop.f32.mrf.mxu0  ;;  %v922_v42 = vpop.f32.mrf.mxu1 }
 0x138   :  { %v1264_v43 = vadd.f32 %v2582_v19, %v1193_v39  ;;  %v1296_v44 = vadd.f32 %v2582_v19, %v1225_v40 }
 0x139   :  { %v797_v47 = vpop.f32.mrf.mxu0  ;;  %v925_v48 = vpop.f32.mrf.mxu1 }
 0x13a   :  { %v1328_v49 = vmax.f32 %v1264_v43, 0.0  ;;  %v1360_v50 = vmax.f32 %v1296_v44, 0.0  ;;  %v1194_v51 = vmul.f32 %v2576_v15, %v797_v47  ;;  %v1226_v52 = vmul.f32 %v2576_v15, %v925_v48 }
 0x13b   :  { %v799_v53 = vpop.f32.mrf.mxu0  ;;  %v927_v54 = vpop.f32.mrf.mxu1 }
 0x13c   :  { %v1993_v55 = vpack.c.bf16 %v1328_v49, %v1327_v45  ;;  %v2073_v56 = vpack.c.bf16 %v1360_v50, %v1359_v46  ;;  %v1265_v57 = vadd.f32 %v2582_v19, %v1194_v51  ;;  %v1297_v58 = vadd.f32 %v2582_v19, %v1226_v52 }
 0x13d   :  { %v800_v59 = vpop.f32.mrf.mxu0  ;;  %v928_v60 = vpop.f32.mrf.mxu1 }
 0x13e   :  { %2113 = vst [vmem:[#allocation3 + $0x48] sm:$0xff] %v1993_v55   ;;  %2129 = vst [vmem:[#allocation3 + $0xc8] sm:$0xff] %v2073_v56   ;;  %v1195_v61 = vmul.f32 %v2576_v15, %v800_v59  ;;  %v1227_v62 = vmul.f32 %v2576_v15, %v928_v60  ;;  %v1329_v3 = vmax.f32 %v1265_v57, 0.0  ;;  %v1361_v4 = vmax.f32 %v1297_v58, 0.0 }
 0x13f   :  { %v802_v63 = vpop.f32.mrf.mxu0  ;;  %v930_v0 = vpop.f32.mrf.mxu1 }
 0x140   :  { %v1266_v1 = vadd.f32 %v2582_v19, %v1195_v61  ;;  %v1298_v2 = vadd.f32 %v2582_v19, %v1227_v62 }
 0x141   :  { %v805_v5 = vpop.f32.mrf.mxu0  ;;  %v933_v6 = vpop.f32.mrf.mxu1 }
 0x142   :  { %v1330_v7 = vmax.f32 %v1266_v1, 0.0  ;;  %v1362_v8 = vmax.f32 %v1298_v2, 0.0  ;;  %v1196_v9 = vmul.f32 %v2576_v15, %v805_v5  ;;  %v1228_v10 = vmul.f32 %v2576_v15, %v933_v6 }
 0x143   :  { %v807_v11 = vpop.f32.mrf.mxu0  ;;  %v935_v12 = vpop.f32.mrf.mxu1 }
 0x144   :  { %v1998_v13 = vpack.c.bf16 %v1330_v7, %v1329_v3  ;;  %v2078_v14 = vpack.c.bf16 %v1362_v8, %v1361_v4  ;;  %v1267_v16 = vadd.f32 %v2582_v19, %v1196_v9  ;;  %v1299_v17 = vadd.f32 %v2582_v19, %v1228_v10 }
 0x145   :  { %v808_v18 = vpop.f32.mrf.mxu0  ;;  %v936_v20 = vpop.f32.mrf.mxu1 }
 0x146   :  { %2114 = vst [vmem:[#allocation3 + $0x50] sm:$0xff] %v1998_v13   ;;  %2130 = vst [vmem:[#allocation3 + $0xd0] sm:$0xff] %v2078_v14   ;;  %v1197_v21 = vmul.f32 %v2576_v15, %v808_v18  ;;  %v1229_v22 = vmul.f32 %v2576_v15, %v936_v20  ;;  %v1331_v27 = vmax.f32 %v1267_v16, 0.0  ;;  %v1363_v28 = vmax.f32 %v1299_v17, 0.0 }
 0x147   :  { %v810_v23 = vpop.f32.mrf.mxu0  ;;  %v938_v24 = vpop.f32.mrf.mxu1 }
 0x148   :  { %v1268_v25 = vadd.f32 %v2582_v19, %v1197_v21  ;;  %v1300_v26 = vadd.f32 %v2582_v19, %v1229_v22 }
 0x149   :  { %v813_v29 = vpop.f32.mrf.mxu0  ;;  %v941_v30 = vpop.f32.mrf.mxu1 }
 0x14a   :  { %v1332_v31 = vmax.f32 %v1268_v25, 0.0  ;;  %v1364_v32 = vmax.f32 %v1300_v26, 0.0  ;;  %v1198_v33 = vmul.f32 %v2576_v15, %v813_v29  ;;  %v1230_v34 = vmul.f32 %v2576_v15, %v941_v30 }
 0x14b   :  { %v815_v35 = vpop.f32.mrf.mxu0  ;;  %v943_v36 = vpop.f32.mrf.mxu1 }
 0x14c   :  { %v2003_v37 = vpack.c.bf16 %v1332_v31, %v1331_v27  ;;  %v2083_v38 = vpack.c.bf16 %v1364_v32, %v1363_v28  ;;  %v1269_v39 = vadd.f32 %v2582_v19, %v1198_v33  ;;  %v1301_v40 = vadd.f32 %v2582_v19, %v1230_v34 }
 0x14d   :  { %v816_v41 = vpop.f32.mrf.mxu0  ;;  %v944_v42 = vpop.f32.mrf.mxu1 }
 0x14e   :  { %2115 = vst [vmem:[#allocation3 + $0x58] sm:$0xff] %v2003_v37   ;;  %2131 = vst [vmem:[#allocation3 + $0xd8] sm:$0xff] %v2083_v38   ;;  %v1199_v43 = vmul.f32 %v2576_v15, %v816_v41  ;;  %v1231_v44 = vmul.f32 %v2576_v15, %v944_v42  ;;  %v1333_v49 = vmax.f32 %v1269_v39, 0.0  ;;  %v1365_v50 = vmax.f32 %v1301_v40, 0.0 }
 0x14f   :  { %v818_v45 = vpop.f32.mrf.mxu0  ;;  %v946_v46 = vpop.f32.mrf.mxu1 }
 0x150   :  { %v1270_v47 = vadd.f32 %v2582_v19, %v1199_v43  ;;  %v1302_v48 = vadd.f32 %v2582_v19, %v1231_v44 }
 0x151   :  { %v821_v51 = vpop.f32.mrf.mxu0  ;;  %v949_v52 = vpop.f32.mrf.mxu1 }
 0x152   :  { %v1334_v53 = vmax.f32 %v1270_v47, 0.0  ;;  %v1366_v54 = vmax.f32 %v1302_v48, 0.0  ;;  %v1200_v55 = vmul.f32 %v2576_v15, %v821_v51  ;;  %v1232_v56 = vmul.f32 %v2576_v15, %v949_v52 }
 0x153   :  { %v823_v57 = vpop.f32.mrf.mxu0  ;;  %v951_v58 = vpop.f32.mrf.mxu1 }
 0x154   :  { %v2008_v59 = vpack.c.bf16 %v1334_v53, %v1333_v49  ;;  %v2088_v60 = vpack.c.bf16 %v1366_v54, %v1365_v50  ;;  %v1271_v61 = vadd.f32 %v2582_v19, %v1200_v55  ;;  %v1303_v62 = vadd.f32 %v2582_v19, %v1232_v56 }
 0x155   :  { %v824_v63 = vpop.f32.mrf.mxu0  ;;  %v952_v0 = vpop.f32.mrf.mxu1 }
 0x156   :  { %2116 = vst [vmem:[#allocation3 + $0x60] sm:$0xff] %v2008_v59   ;;  %2132 = vst [vmem:[#allocation3 + $0xe0] sm:$0xff] %v2088_v60   ;;  %v1201_v1 = vmul.f32 %v2576_v15, %v824_v63  ;;  %v1233_v2 = vmul.f32 %v2576_v15, %v952_v0  ;;  %v1335_v7 = vmax.f32 %v1271_v61, 0.0  ;;  %v1367_v8 = vmax.f32 %v1303_v62, 0.0 }
 0x157   :  { %v826_v3 = vpop.f32.mrf.mxu0  ;;  %v954_v4 = vpop.f32.mrf.mxu1 }
 0x158   :  { %v1272_v5 = vadd.f32 %v2582_v19, %v1201_v1  ;;  %v1304_v6 = vadd.f32 %v2582_v19, %v1233_v2 }
 0x159   :  { %v829_v9 = vpop.f32.mrf.mxu0  ;;  %v957_v10 = vpop.f32.mrf.mxu1 }
 0x15a   :  { %v1336_v11 = vmax.f32 %v1272_v5, 0.0  ;;  %v1368_v12 = vmax.f32 %v1304_v6, 0.0  ;;  %v1202_v13 = vmul.f32 %v2576_v15, %v829_v9  ;;  %v1234_v14 = vmul.f32 %v2576_v15, %v957_v10 }
 0x15b   :  { %v831_v16 = vpop.f32.mrf.mxu0  ;;  %v959_v17 = vpop.f32.mrf.mxu1 }
 0x15c   :  { %v2013_v18 = vpack.c.bf16 %v1336_v11, %v1335_v7  ;;  %v2093_v20 = vpack.c.bf16 %v1368_v12, %v1367_v8  ;;  %v1273_v21 = vadd.f32 %v2582_v19, %v1202_v13  ;;  %v1305_v22 = vadd.f32 %v2582_v19, %v1234_v14 }
 0x15d   :  { %v832_v23 = vpop.f32.mrf.mxu0  ;;  %v960_v24 = vpop.f32.mrf.mxu1 }
 0x15e   :  { %2117 = vst [vmem:[#allocation3 + $0x68] sm:$0xff] %v2013_v18   ;;  %2133 = vst [vmem:[#allocation3 + $0xe8] sm:$0xff] %v2093_v20   ;;  %v1203_v25 = vmul.f32 %v2576_v15, %v832_v23  ;;  %v1235_v26 = vmul.f32 %v2576_v15, %v960_v24  ;;  %v1337_v31 = vmax.f32 %v1273_v21, 0.0  ;;  %v1369_v32 = vmax.f32 %v1305_v22, 0.0 }
 0x15f   :  { %v834_v27 = vpop.f32.mrf.mxu0  ;;  %v962_v28 = vpop.f32.mrf.mxu1 }
 0x160   :  { %v1274_v29 = vadd.f32 %v2582_v19, %v1203_v25  ;;  %v1306_v30 = vadd.f32 %v2582_v19, %v1235_v26 }
 0x161   :  { %v837_v33 = vpop.f32.mrf.mxu0  ;;  %v965_v34 = vpop.f32.mrf.mxu1 }
 0x162   :  { %v1338_v35 = vmax.f32 %v1274_v29, 0.0  ;;  %v1370_v36 = vmax.f32 %v1306_v30, 0.0  ;;  %v1204_v37 = vmul.f32 %v2576_v15, %v837_v33  ;;  %v1236_v38 = vmul.f32 %v2576_v15, %v965_v34 }
 0x163   :  { %v839_v39 = vpop.f32.mrf.mxu0  ;;  %v967_v40 = vpop.f32.mrf.mxu1 }
 0x164   :  { %v2018_v41 = vpack.c.bf16 %v1338_v35, %v1337_v31  ;;  %v2098_v42 = vpack.c.bf16 %v1370_v36, %v1369_v32  ;;  %v1275_v45 = vadd.f32 %v2582_v19, %v1204_v37  ;;  %v1307_v46 = vadd.f32 %v2582_v19, %v1236_v38 }
 0x165   :  { %v840_v43 = vpop.f32.mrf.mxu0  ;;  %v968_v44 = vpop.f32.mrf.mxu1 }
 0x166   :  { %2118 = vst [vmem:[#allocation3 + $0x70] sm:$0xff] %v2018_v41   ;;  %2134 = vst [vmem:[#allocation3 + $0xf0] sm:$0xff] %v2098_v42   ;;  %v1205_v47 = vmul.f32 %v2576_v15, %v840_v43  ;;  %v1237_v48 = vmul.f32 %v2576_v15, %v968_v44  ;;  %v1339_v53 = vmax.f32 %v1275_v45, 0.0  ;;  %v1371_v54 = vmax.f32 %v1307_v46, 0.0 }
 0x167   :  { %v842_v49 = vpop.f32.mrf.mxu0  ;;  %v970_v50 = vpop.f32.mrf.mxu1 }
 0x168   :  { %v1276_v51 = vadd.f32 %v2582_v19, %v1205_v47  ;;  %v1308_v52 = vadd.f32 %v2582_v19, %v1237_v48 }
 0x16a   :  { %v1340_v55 = vmax.f32 %v1276_v51, 0.0  ;;  %v1372_v56 = vmax.f32 %v1308_v52, 0.0 }
 0x16c   :  { %v2023_v57 = vpack.c.bf16 %v1340_v55, %v1339_v53  ;;  %v2103_v58 = vpack.c.bf16 %v1372_v56, %v1371_v54 }
 0x16e   :  { %2119 = vst [vmem:[#allocation3 + $0x78] sm:$0xff] %v2023_v57   ;;  %2135 = vst [vmem:[#allocation3 + $0xf8] sm:$0xff] %v2103_v58  }
 0x16f   :  { %2278 = shalt.err (!%p2275_p4)
}
 0x170   :  { %s2292_s6 = smov 64   ;;  %s2293_s7 = smov 4  }
 0x171   :  { %1704 = dma.vmem_to_hbm [thread:$0]  %s1699_s2, 4096, %s2718_s4, [#allocation4], %s2292_s6, %s2292_s6, %s2293_s7  }
 0x172   :  { %2287 = dma.done.wait [#allocation4], 4096  }
 0x173   :  { %2288 = vsyncadd [#allocation4], 4294963200 }
 0x174   :  { %1708 = vsyncpa [#allocation4], 1 }

</bundles_post_ra>
